<compile_context>
chip_gen: v7x
topology: tpu7x:2x2x1
jax: 0.10.0
libtpu: 0.0.40
codegen_flags: <defaults>
</compile_context>

<pallas_src>
import jax
import jax.numpy as jnp
from jax.experimental import pallas as pl
from jax.experimental.pallas import tpu as pltpu

T_STEPS = 6        # 6 meals per day (fixed in the PyTorch module)
SUBLANE = 8        # f32 sublane count
LANE = 128         # lane width


def decoder_kernel(
    # inputs
    z_ref,                 # (TB, L)
    wl_ref, bl_ref,        # (L, H), (1, H)   latent -> hidden
    wi3_ref, bg3_ref,      # (H, 3H), (1, 3H) fused input-side gates  [r|z|n]
    wf4_ref, bg4_ref,      # (H, 4H), (1, 4H) fused t>=1 gates [r|z|n_in|n_h]
    bhn_ref,               # (1, H)           hidden new-gate bias (t=0 path)
    whead_ref, bhead_ref,  # (H, P), (1, P)   fused padded heads [cls|en|mac|0]
    # outputs
    out_ref,               # (TB, T*P)        per-step head slab, lane-dense
):
    TB = z_ref.shape[0]
    H = wl_ref.shape[1]
    P = whead_ref.shape[1]

    # ---- hoisted weight / bias reads (loop body reuses these 5-6x) ----------
    wf4 = wf4_ref[...]
    whead = whead_ref[...]
    bg4 = jnp.broadcast_to(bg4_ref[...], (TB, 4 * H))
    bhead = jnp.broadcast_to(bhead_ref[...], (TB, P))

    # ---- latent -> hidden projection (first GRU input) ----------------------
    z = z_ref[...].astype(jnp.float32)
    x0 = jnp.dot(z, wl_ref[...], preferred_element_type=jnp.float32) + bl_ref[...]

    # ---- t = 0 : h == 0, hidden-side matmuls vanish --------------------------
    #   r = sigmoid(W_ir x + b_r)            (b_r = b_ir + b_hr)
    #   u = sigmoid(W_iz x + b_z)
    #   n = tanh   (W_in x + b_in + r * b_hn)
    #   h = (1 - u) * n
    g = jnp.dot(x0, wi3_ref[...], preferred_element_type=jnp.float32) + bg3_ref[...]
    r = jax.nn.sigmoid(g[:, 0:H])
    u = jax.nn.sigmoid(g[:, H:2 * H])
    n = jnp.tanh(g[:, 2 * H:3 * H] + r * bhn_ref[...])
    h = (1.0 - u) * n

    head = jnp.dot(h, whead, preferred_element_type=jnp.float32) + bhead
    out_ref[:, 0:P] = head

    # ---- t >= 1 : inp == h_prev, one fused 4H-wide gate dot per step ---------
    for t in range(1, T_STEPS):  # static unroll (5 steps)
        g = jnp.dot(h, wf4, preferred_element_type=jnp.float32) + bg4
        r = jax.nn.sigmoid(g[:, 0:H])
        u = jax.nn.sigmoid(g[:, H:2 * H])
        n = jnp.tanh(g[:, 2 * H:3 * H] + r * g[:, 3 * H:4 * H])
        h = (1.0 - u) * n + u * h

        head = jnp.dot(h, whead, preferred_element_type=jnp.float32) + bhead
        out_ref[:, t * P:(t + 1) * P] = head  # 128-aligned lane-dense store


def decoder_forward(z, params):
    B, L = z.shape
    H = params["W_l2h"].shape[1]
    C = params["W_cls"].shape[1]
    M = params["W_mac"].shape[1]

    head_w = C + 1 + M                               # cls | energy | macros
    P = ((head_w + LANE - 1) // LANE) * LANE         # pad head width to 128
    TB = SUBLANE                                     # batch tile (sublane-aligned)
    B_pad = ((B + TB - 1) // TB) * TB

    # ---- wrapper-side fused / padded weights (tiny, trace-time XLA ops) ------
    W_i3 = jnp.concatenate([params["W_ir"], params["W_iz"], params["W_in"]], axis=1)
    b_g3 = jnp.concatenate([params["b_r"], params["b_z"], params["b_in"]], axis=1)
    W_f4 = jnp.concatenate(
        [params["W_ir"] + params["W_hr"],
         params["W_iz"] + params["W_hz"],
         params["W_in"], params["W_hn"]], axis=1)
    b_g4 = jnp.concatenate(
        [params["b_r"], params["b_z"], params["b_in"], params["b_hn"]], axis=1)

    W_head = jnp.pad(
        jnp.concatenate([params["W_cls"], params["W_en"], params["W_mac"]], axis=1),
        ((0, 0), (0, P - head_w)))
    b_head = jnp.pad(
        jnp.concatenate([params["b_cls"], params["b_en"], params["b_mac"]], axis=1),
        ((0, 0), (0, P - head_w)))

    z_p = jnp.pad(z.astype(jnp.float32), ((0, B_pad - B), (0, 0)))

    args = (
        z_p,
        params["W_l2h"], params["b_l2h"],
        W_i3, b_g3,
        W_f4, b_g4,
        params["b_hn"],
        W_head, b_head,
    )

    def resident(shape):  # weights: same block for every grid step (VMEM resident)
        return pl.BlockSpec(shape, lambda i: (0, 0))

    in_specs = [pl.BlockSpec((TB, L), lambda i: (i, 0))] + [
        resident(a.shape) for a in args[1:]
    ]
    out_spec = pl.BlockSpec((TB, T_STEPS * P), lambda i: (i, 0))

    slab = pl.pallas_call(
        decoder_kernel,
        out_shape=jax.ShapeDtypeStruct((B_pad, T_STEPS * P), jnp.float32),
        grid=(B_pad // TB,),
        in_specs=in_specs,
        out_specs=out_spec,
        compiler_params=pltpu.CompilerParams(
            dimension_semantics=("parallel",)),
    )(*args)

    # ---- free reshape + slices (no transposes, no extra kernel outputs) ------
    slab = slab[:B].reshape(B, T_STEPS, P)
    class_logits_seq = slab[:, :, 0:C]                       # (B, T, C)
    energies_tensor = slab[:, :, C]                          # (B, T)
    total_energy = energies_tensor.sum(axis=1)               # (B,)
    total_macros = slab[:, :, C + 1:C + 1 + M].sum(axis=1)   # (B, M)
    return class_logits_seq, total_energy, total_macros, energies_tensor


def init_params(key, latent_dim, hidden_dim, num_classes, macro_dim):
    """Deterministic synthetic parameters matching the PyTorch module's shapes."""
    keys = jax.random.split(key, 6)

    def lin(k, fan_in, fan_out):
        kw, kb = jax.random.split(k)
        bound = 1.0 / jnp.sqrt(jnp.float32(fan_in))
        W = jax.random.uniform(kw, (fan_in, fan_out), jnp.float32, -bound, bound)
        b = jax.random.uniform(kb, (1, fan_out), jnp.float32, -bound, bound)
        return W, b

    H = hidden_dim
    W_l2h, b_l2h = lin(keys[0], latent_dim, H)
    # GRU weights: PyTorch stores weight_ih/(hh) as (3H, H) in gate order (r, z, n);
    # generated here pre-transposed as (H, 3H) and split per gate.
    W_ih, b_ih = lin(keys[1], H, 3 * H)
    W_hh, b_hh = lin(keys[2], H, 3 * H)
    W_cls, b_cls = lin(keys[3], H, num_classes)
    W_en, b_en = lin(keys[4], H, 1)
    W_mac, b_mac = lin(keys[5], H, macro_dim)

    return dict(
        W_l2h=W_l2h, b_l2h=b_l2h,
        W_ir=W_ih[:, 0:H], W_iz=W_ih[:, H:2 * H], W_in=W_ih[:, 2 * H:3 * H],
        W_hr=W_hh[:, 0:H], W_hz=W_hh[:, H:2 * H], W_hn=W_hh[:, 2 * H:3 * H],
        b_r=b_ih[:, 0:H] + b_hh[:, 0:H],
        b_z=b_ih[:, H:2 * H] + b_hh[:, H:2 * H],
        b_in=b_ih[:, 2 * H:3 * H],
        b_hn=b_hh[:, 2 * H:3 * H],
        W_cls=W_cls, b_cls=b_cls,
        W_en=W_en, b_en=b_en,
        W_mac=W_mac, b_mac=b_mac,
    )


def reference_forward(z, params):
    """Pure-JAX replica of the PyTorch Decoder.forward (for correctness check)."""
    B = z.shape[0]
    H = params["W_l2h"].shape[1]
    M = params["W_mac"].shape[1]
    h = jnp.zeros((B, H), jnp.float32)
    inp = z @ params["W_l2h"] + params["b_l2h"]
    logits_seq, energies_list = [], []
    total_macros = jnp.zeros((B, M), jnp.float32)
    for _ in range(T_STEPS):
        r = jax.nn.sigmoid(inp @ params["W_ir"] + h @ params["W_hr"] + params["b_r"])
        u = jax.nn.sigmoid(inp @ params["W_iz"] + h @ params["W_hz"] + params["b_z"])
        n = jnp.tanh(inp @ params["W_in"] + params["b_in"]
                     + r * (h @ params["W_hn"] + params["b_hn"]))
        h = (1.0 - u) * n + u * h
        logits_seq.append(h @ params["W_cls"] + params["b_cls"])
        energies_list.append((h @ params["W_en"] + params["b_en"])[:, 0])
        total_macros = total_macros + h @ params["W_mac"] + params["b_mac"]
        inp = h
    logits_seq = jnp.stack(logits_seq, axis=1)
    energies = jnp.stack(energies_list, axis=1)
    return logits_seq, energies.sum(axis=1), total_macros, energies


if __name__ == "__main__":
    latent_dim, hidden_dim, num_classes, macro_dim = 8, 32, 16, 4
    batch = 2

    key = jax.random.PRNGKey(0)
    kp, kz = jax.random.split(key)
    params = init_params(kp, latent_dim, hidden_dim, num_classes, macro_dim)
    z = jax.random.normal(kz, (batch, latent_dim), dtype=jnp.float32)

    outs = decoder_forward(z, params)
    outs = jax.block_until_ready(outs)

    refs = reference_forward(z, params)
    expected_shapes = [(batch, T_STEPS, num_classes), (batch,),
                       (batch, macro_dim), (batch, T_STEPS)]
    for o, r, s in zip(outs, refs, expected_shapes):
        assert o.shape == s, (o.shape, s)
        assert jnp.allclose(o, r, atol=1e-4, rtol=1e-4)

    print("KERNEL_OK")
</pallas_src>

<mosaic_0001>
module attributes {stable_mosaic.version = 11 : i64} {
  func.func @decoder_kernel(%arg0: i32, %arg1: memref<8x8xf32, #tpu.memory_space<vmem>>, %arg2: memref<8x32xf32, #tpu.memory_space<vmem>>, %arg3: memref<1x32xf32, #tpu.memory_space<vmem>>, %arg4: memref<32x96xf32, #tpu.memory_space<vmem>>, %arg5: memref<1x96xf32, #tpu.memory_space<vmem>>, %arg6: memref<32x128xf32, #tpu.memory_space<vmem>>, %arg7: memref<1x128xf32, #tpu.memory_space<vmem>>, %arg8: memref<1x32xf32, #tpu.memory_space<vmem>>, %arg9: memref<32x128xf32, #tpu.memory_space<vmem>>, %arg10: memref<1x128xf32, #tpu.memory_space<vmem>>, %arg11: memref<8x768xf32, #tpu.memory_space<vmem>>) attributes {dimension_semantics = [#tpu.dimension_semantics<parallel>], iteration_bounds = array<i64: 1>, scalar_prefetch = 0 : i64, scratch_operands = 0 : i64, tpu.core_type = #tpu.core_type<tc>, window_params = [{transform_indices = @transform_0, window_bounds = array<i64: 8, 8>}, {pipeline_mode = #tpu.pipeline_mode<synchronous>, transform_indices = @transform_1, window_bounds = array<i64: 8, 32>}, {pipeline_mode = #tpu.pipeline_mode<synchronous>, transform_indices = @transform_2, window_bounds = array<i64: 1, 32>}, {pipeline_mode = #tpu.pipeline_mode<synchronous>, transform_indices = @transform_3, window_bounds = array<i64: 32, 96>}, {pipeline_mode = #tpu.pipeline_mode<synchronous>, transform_indices = @transform_4, window_bounds = array<i64: 1, 96>}, {pipeline_mode = #tpu.pipeline_mode<synchronous>, transform_indices = @transform_5, window_bounds = array<i64: 32, 128>}, {pipeline_mode = #tpu.pipeline_mode<synchronous>, transform_indices = @transform_6, window_bounds = array<i64: 1, 128>}, {pipeline_mode = #tpu.pipeline_mode<synchronous>, transform_indices = @transform_7, window_bounds = array<i64: 1, 32>}, {pipeline_mode = #tpu.pipeline_mode<synchronous>, transform_indices = @transform_8, window_bounds = array<i64: 32, 128>}, {pipeline_mode = #tpu.pipeline_mode<synchronous>, transform_indices = @transform_9, window_bounds = array<i64: 1, 128>}, {transform_indices = @transform_10, window_bounds = array<i64: 8, 768>}]} {
    %c0 = arith.constant 0 : index
    %c0_0 = arith.constant 0 : index
    %0 = vector.load %arg6[%c0, %c0_0] : memref<32x128xf32, #tpu.memory_space<vmem>>, vector<32x128xf32>
    %c0_1 = arith.constant 0 : index
    %c0_2 = arith.constant 0 : index
    %1 = vector.load %arg9[%c0_1, %c0_2] : memref<32x128xf32, #tpu.memory_space<vmem>>, vector<32x128xf32>
    %c0_3 = arith.constant 0 : index
    %c0_4 = arith.constant 0 : index
    %2 = vector.load %arg7[%c0_3, %c0_4] : memref<1x128xf32, #tpu.memory_space<vmem>>, vector<1x128xf32>
    %3 = vector.shape_cast %2 : vector<1x128xf32> to vector<1x128xf32>
    %4 = vector.broadcast %3 : vector<1x128xf32> to vector<8x128xf32>
    %c0_5 = arith.constant 0 : index
    %c0_6 = arith.constant 0 : index
    %5 = vector.load %arg10[%c0_5, %c0_6] : memref<1x128xf32, #tpu.memory_space<vmem>>, vector<1x128xf32>
    %6 = vector.shape_cast %5 : vector<1x128xf32> to vector<1x128xf32>
    %7 = vector.broadcast %6 : vector<1x128xf32> to vector<8x128xf32>
    %c0_7 = arith.constant 0 : index
    %c0_8 = arith.constant 0 : index
    %8 = vector.load %arg1[%c0_7, %c0_8] : memref<8x8xf32, #tpu.memory_space<vmem>>, vector<8x8xf32>
    %c0_9 = arith.constant 0 : index
    %c0_10 = arith.constant 0 : index
    %9 = vector.load %arg2[%c0_9, %c0_10] : memref<8x32xf32, #tpu.memory_space<vmem>>, vector<8x32xf32>
    %cst = arith.constant dense<0.000000e+00> : vector<8x32xf32>
    %10 = tpu.matmul %8, %9, %cst {dimension_numbers = #tpu.dot_dimension_numbers<[1], [0], [0], [1], [0, 0, 1, 1], [], []>} : vector<8x8xf32>, vector<8x32xf32>, vector<8x32xf32> -> vector<8x32xf32>
    %c0_11 = arith.constant 0 : index
    %c0_12 = arith.constant 0 : index
    %11 = vector.load %arg3[%c0_11, %c0_12] : memref<1x32xf32, #tpu.memory_space<vmem>>, vector<1x32xf32>
    %12 = vector.broadcast %11 : vector<1x32xf32> to vector<8x32xf32>
    %13 = arith.addf %10, %12 : vector<8x32xf32>
    %c0_13 = arith.constant 0 : index
    %c0_14 = arith.constant 0 : index
    %14 = vector.load %arg4[%c0_13, %c0_14] : memref<32x96xf32, #tpu.memory_space<vmem>>, vector<32x96xf32>
    %cst_15 = arith.constant dense<0.000000e+00> : vector<8x96xf32>
    %15 = tpu.matmul %13, %14, %cst_15 {dimension_numbers = #tpu.dot_dimension_numbers<[1], [0], [0], [1], [0, 0, 1, 1], [], []>} : vector<8x32xf32>, vector<32x96xf32>, vector<8x96xf32> -> vector<8x96xf32>
    %c0_16 = arith.constant 0 : index
    %c0_17 = arith.constant 0 : index
    %16 = vector.load %arg5[%c0_16, %c0_17] : memref<1x96xf32, #tpu.memory_space<vmem>>, vector<1x96xf32>
    %17 = vector.broadcast %16 : vector<1x96xf32> to vector<8x96xf32>
    %18 = arith.addf %15, %17 : vector<8x96xf32>
    %19 = vector.extract_strided_slice %18 {offsets = [0, 0], sizes = [8, 32], strides = [1, 1]} : vector<8x96xf32> to vector<8x32xf32>
    %20 = arith.negf %19 : vector<8x32xf32>
    %21 = math.exp %20 : vector<8x32xf32>
    %cst_18 = arith.constant 1.000000e+00 : f32
    %22 = vector.broadcast %cst_18 : f32 to vector<8x32xf32>
    %23 = arith.addf %22, %21 : vector<8x32xf32>
    %24 = arith.divf %22, %23 : vector<8x32xf32>
    %25 = vector.extract_strided_slice %18 {offsets = [0, 32], sizes = [8, 32], strides = [1, 1]} : vector<8x96xf32> to vector<8x32xf32>
    %26 = arith.negf %25 : vector<8x32xf32>
    %27 = math.exp %26 : vector<8x32xf32>
    %cst_19 = arith.constant 1.000000e+00 : f32
    %28 = vector.broadcast %cst_19 : f32 to vector<8x32xf32>
    %29 = arith.addf %28, %27 : vector<8x32xf32>
    %30 = arith.divf %28, %29 : vector<8x32xf32>
    %31 = vector.extract_strided_slice %18 {offsets = [0, 64], sizes = [8, 32], strides = [1, 1]} : vector<8x96xf32> to vector<8x32xf32>
    %c0_20 = arith.constant 0 : index
    %c0_21 = arith.constant 0 : index
    %32 = vector.load %arg8[%c0_20, %c0_21] : memref<1x32xf32, #tpu.memory_space<vmem>>, vector<1x32xf32>
    %33 = vector.broadcast %32 : vector<1x32xf32> to vector<8x32xf32>
    %34 = arith.mulf %24, %33 : vector<8x32xf32>
    %35 = arith.addf %31, %34 : vector<8x32xf32>
    %36 = math.tanh %35 : vector<8x32xf32>
    %cst_22 = arith.constant 1.000000e+00 : f32
    %37 = vector.broadcast %cst_22 : f32 to vector<8x32xf32>
    %38 = arith.subf %37, %30 : vector<8x32xf32>
    %39 = arith.mulf %38, %36 : vector<8x32xf32>
    %cst_23 = arith.constant dense<0.000000e+00> : vector<8x128xf32>
    %40 = tpu.matmul %39, %1, %cst_23 {dimension_numbers = #tpu.dot_dimension_numbers<[1], [0], [0], [1], [0, 0, 1, 1], [], []>} : vector<8x32xf32>, vector<32x128xf32>, vector<8x128xf32> -> vector<8x128xf32>
    %41 = arith.addf %40, %7 : vector<8x128xf32>
    %c0_24 = arith.constant 0 : index
    %c0_25 = arith.constant 0 : index
    %42 = vector.load %arg11[%c0_24, %c0_25] : memref<8x768xf32, #tpu.memory_space<vmem>>, vector<8x128xf32>
    tpu.vector_store %arg11[%c0_24, %c0_25], %41 {strides = array<i32>} : memref<8x768xf32, #tpu.memory_space<vmem>>, vector<8x128xf32>,
    %cst_26 = arith.constant dense<0.000000e+00> : vector<8x128xf32>
    %43 = tpu.matmul %39, %0, %cst_26 {dimension_numbers = #tpu.dot_dimension_numbers<[1], [0], [0], [1], [0, 0, 1, 1], [], []>} : vector<8x32xf32>, vector<32x128xf32>, vector<8x128xf32> -> vector<8x128xf32>
    %44 = arith.addf %43, %4 : vector<8x128xf32>
    %45 = vector.extract_strided_slice %44 {offsets = [0, 0], sizes = [8, 32], strides = [1, 1]} : vector<8x128xf32> to vector<8x32xf32>
    %46 = arith.negf %45 : vector<8x32xf32>
    %47 = math.exp %46 : vector<8x32xf32>
    %cst_27 = arith.constant 1.000000e+00 : f32
    %48 = vector.broadcast %cst_27 : f32 to vector<8x32xf32>
    %49 = arith.addf %48, %47 : vector<8x32xf32>
    %50 = arith.divf %48, %49 : vector<8x32xf32>
    %51 = vector.extract_strided_slice %44 {offsets = [0, 32], sizes = [8, 32], strides = [1, 1]} : vector<8x128xf32> to vector<8x32xf32>
    %52 = arith.negf %51 : vector<8x32xf32>
    %53 = math.exp %52 : vector<8x32xf32>
    %cst_28 = arith.constant 1.000000e+00 : f32
    %54 = vector.broadcast %cst_28 : f32 to vector<8x32xf32>
    %55 = arith.addf %54, %53 : vector<8x32xf32>
    %56 = arith.divf %54, %55 : vector<8x32xf32>
    %57 = vector.extract_strided_slice %44 {offsets = [0, 64], sizes = [8, 32], strides = [1, 1]} : vector<8x128xf32> to vector<8x32xf32>
    %58 = vector.extract_strided_slice %44 {offsets = [0, 96], sizes = [8, 32], strides = [1, 1]} : vector<8x128xf32> to vector<8x32xf32>
    %59 = arith.mulf %50, %58 : vector<8x32xf32>
    %60 = arith.addf %57, %59 : vector<8x32xf32>
    %61 = math.tanh %60 : vector<8x32xf32>
    %cst_29 = arith.constant 1.000000e+00 : f32
    %62 = vector.broadcast %cst_29 : f32 to vector<8x32xf32>
    %63 = arith.subf %62, %56 : vector<8x32xf32>
    %64 = arith.mulf %63, %61 : vector<8x32xf32>
    %65 = arith.mulf %56, %39 : vector<8x32xf32>
    %66 = arith.addf %64, %65 : vector<8x32xf32>
    %cst_30 = arith.constant dense<0.000000e+00> : vector<8x128xf32>
    %67 = tpu.matmul %66, %1, %cst_30 {dimension_numbers = #tpu.dot_dimension_numbers<[1], [0], [0], [1], [0, 0, 1, 1], [], []>} : vector<8x32xf32>, vector<32x128xf32>, vector<8x128xf32> -> vector<8x128xf32>
    %68 = arith.addf %67, %7 : vector<8x128xf32>
    %c0_31 = arith.constant 0 : index
    %c128 = arith.constant 128 : index
    %69 = vector.load %arg11[%c0_31, %c128] : memref<8x768xf32, #tpu.memory_space<vmem>>, vector<8x128xf32>
    tpu.vector_store %arg11[%c0_31, %c128], %68 {strides = array<i32>} : memref<8x768xf32, #tpu.memory_space<vmem>>, vector<8x128xf32>,
    %cst_32 = arith.constant dense<0.000000e+00> : vector<8x128xf32>
    %70 = tpu.matmul %66, %0, %cst_32 {dimension_numbers = #tpu.dot_dimension_numbers<[1], [0], [0], [1], [0, 0, 1, 1], [], []>} : vector<8x32xf32>, vector<32x128xf32>, vector<8x128xf32> -> vector<8x128xf32>
    %71 = arith.addf %70, %4 : vector<8x128xf32>
    %72 = vector.extract_strided_slice %71 {offsets = [0, 0], sizes = [8, 32], strides = [1, 1]} : vector<8x128xf32> to vector<8x32xf32>
    %73 = arith.negf %72 : vector<8x32xf32>
    %74 = math.exp %73 : vector<8x32xf32>
    %cst_33 = arith.constant 1.000000e+00 : f32
    %75 = vector.broadcast %cst_33 : f32 to vector<8x32xf32>
    %76 = arith.addf %75, %74 : vector<8x32xf32>
    %77 = arith.divf %75, %76 : vector<8x32xf32>
    %78 = vector.extract_strided_slice %71 {offsets = [0, 32], sizes = [8, 32], strides = [1, 1]} : vector<8x128xf32> to vector<8x32xf32>
    %79 = arith.negf %78 : vector<8x32xf32>
    %80 = math.exp %79 : vector<8x32xf32>
    %cst_34 = arith.constant 1.000000e+00 : f32
    %81 = vector.broadcast %cst_34 : f32 to vector<8x32xf32>
    %82 = arith.addf %81, %80 : vector<8x32xf32>
    %83 = arith.divf %81, %82 : vector<8x32xf32>
    %84 = vector.extract_strided_slice %71 {offsets = [0, 64], sizes = [8, 32], strides = [1, 1]} : vector<8x128xf32> to vector<8x32xf32>
    %85 = vector.extract_strided_slice %71 {offsets = [0, 96], sizes = [8, 32], strides = [1, 1]} : vector<8x128xf32> to vector<8x32xf32>
    %86 = arith.mulf %77, %85 : vector<8x32xf32>
    %87 = arith.addf %84, %86 : vector<8x32xf32>
    %88 = math.tanh %87 : vector<8x32xf32>
    %cst_35 = arith.constant 1.000000e+00 : f32
    %89 = vector.broadcast %cst_35 : f32 to vector<8x32xf32>
    %90 = arith.subf %89, %83 : vector<8x32xf32>
    %91 = arith.mulf %90, %88 : vector<8x32xf32>
    %92 = arith.mulf %83, %66 : vector<8x32xf32>
    %93 = arith.addf %91, %92 : vector<8x32xf32>
    %cst_36 = arith.constant dense<0.000000e+00> : vector<8x128xf32>
    %94 = tpu.matmul %93, %1, %cst_36 {dimension_numbers = #tpu.dot_dimension_numbers<[1], [0], [0], [1], [0, 0, 1, 1], [], []>} : vector<8x32xf32>, vector<32x128xf32>, vector<8x128xf32> -> vector<8x128xf32>
    %95 = arith.addf %94, %7 : vector<8x128xf32>
    %c0_37 = arith.constant 0 : index
    %c256 = arith.constant 256 : index
    %96 = vector.load %arg11[%c0_37, %c256] : memref<8x768xf32, #tpu.memory_space<vmem>>, vector<8x128xf32>
    tpu.vector_store %arg11[%c0_37, %c256], %95 {strides = array<i32>} : memref<8x768xf32, #tpu.memory_space<vmem>>, vector<8x128xf32>,
    %cst_38 = arith.constant dense<0.000000e+00> : vector<8x128xf32>
    %97 = tpu.matmul %93, %0, %cst_38 {dimension_numbers = #tpu.dot_dimension_numbers<[1], [0], [0], [1], [0, 0, 1, 1], [], []>} : vector<8x32xf32>, vector<32x128xf32>, vector<8x128xf32> -> vector<8x128xf32>
    %98 = arith.addf %97, %4 : vector<8x128xf32>
    %99 = vector.extract_strided_slice %98 {offsets = [0, 0], sizes = [8, 32], strides = [1, 1]} : vector<8x128xf32> to vector<8x32xf32>
    %100 = arith.negf %99 : vector<8x32xf32>
    %101 = math.exp %100 : vector<8x32xf32>
    %cst_39 = arith.constant 1.000000e+00 : f32
    %102 = vector.broadcast %cst_39 : f32 to vector<8x32xf32>
    %103 = arith.addf %102, %101 : vector<8x32xf32>
    %104 = arith.divf %102, %103 : vector<8x32xf32>
    %105 = vector.extract_strided_slice %98 {offsets = [0, 32], sizes = [8, 32], strides = [1, 1]} : vector<8x128xf32> to vector<8x32xf32>
    %106 = arith.negf %105 : vector<8x32xf32>
    %107 = math.exp %106 : vector<8x32xf32>
    %cst_40 = arith.constant 1.000000e+00 : f32
    %108 = vector.broadcast %cst_40 : f32 to vector<8x32xf32>
    %109 = arith.addf %108, %107 : vector<8x32xf32>
    %110 = arith.divf %108, %109 : vector<8x32xf32>
    %111 = vector.extract_strided_slice %98 {offsets = [0, 64], sizes = [8, 32], strides = [1, 1]} : vector<8x128xf32> to vector<8x32xf32>
    %112 = vector.extract_strided_slice %98 {offsets = [0, 96], sizes = [8, 32], strides = [1, 1]} : vector<8x128xf32> to vector<8x32xf32>
    %113 = arith.mulf %104, %112 : vector<8x32xf32>
    %114 = arith.addf %111, %113 : vector<8x32xf32>
    %115 = math.tanh %114 : vector<8x32xf32>
    %cst_41 = arith.constant 1.000000e+00 : f32
    %116 = vector.broadcast %cst_41 : f32 to vector<8x32xf32>
    %117 = arith.subf %116, %110 : vector<8x32xf32>
    %118 = arith.mulf %117, %115 : vector<8x32xf32>
    %119 = arith.mulf %110, %93 : vector<8x32xf32>
    %120 = arith.addf %118, %119 : vector<8x32xf32>
    %cst_42 = arith.constant dense<0.000000e+00> : vector<8x128xf32>
    %121 = tpu.matmul %120, %1, %cst_42 {dimension_numbers = #tpu.dot_dimension_numbers<[1], [0], [0], [1], [0, 0, 1, 1], [], []>} : vector<8x32xf32>, vector<32x128xf32>, vector<8x128xf32> -> vector<8x128xf32>
    %122 = arith.addf %121, %7 : vector<8x128xf32>
    %c0_43 = arith.constant 0 : index
    %c384 = arith.constant 384 : index
    %123 = vector.load %arg11[%c0_43, %c384] : memref<8x768xf32, #tpu.memory_space<vmem>>, vector<8x128xf32>
    tpu.vector_store %arg11[%c0_43, %c384], %122 {strides = array<i32>} : memref<8x768xf32, #tpu.memory_space<vmem>>, vector<8x128xf32>,
    %cst_44 = arith.constant dense<0.000000e+00> : vector<8x128xf32>
    %124 = tpu.matmul %120, %0, %cst_44 {dimension_numbers = #tpu.dot_dimension_numbers<[1], [0], [0], [1], [0, 0, 1, 1], [], []>} : vector<8x32xf32>, vector<32x128xf32>, vector<8x128xf32> -> vector<8x128xf32>
    %125 = arith.addf %124, %4 : vector<8x128xf32>
    %126 = vector.extract_strided_slice %125 {offsets = [0, 0], sizes = [8, 32], strides = [1, 1]} : vector<8x128xf32> to vector<8x32xf32>
    %127 = arith.negf %126 : vector<8x32xf32>
    %128 = math.exp %127 : vector<8x32xf32>
    %cst_45 = arith.constant 1.000000e+00 : f32
    %129 = vector.broadcast %cst_45 : f32 to vector<8x32xf32>
    %130 = arith.addf %129, %128 : vector<8x32xf32>
    %131 = arith.divf %129, %130 : vector<8x32xf32>
    %132 = vector.extract_strided_slice %125 {offsets = [0, 32], sizes = [8, 32], strides = [1, 1]} : vector<8x128xf32> to vector<8x32xf32>
    %133 = arith.negf %132 : vector<8x32xf32>
    %134 = math.exp %133 : vector<8x32xf32>
    %cst_46 = arith.constant 1.000000e+00 : f32
    %135 = vector.broadcast %cst_46 : f32 to vector<8x32xf32>
    %136 = arith.addf %135, %134 : vector<8x32xf32>
    %137 = arith.divf %135, %136 : vector<8x32xf32>
    %138 = vector.extract_strided_slice %125 {offsets = [0, 64], sizes = [8, 32], strides = [1, 1]} : vector<8x128xf32> to vector<8x32xf32>
    %139 = vector.extract_strided_slice %125 {offsets = [0, 96], sizes = [8, 32], strides = [1, 1]} : vector<8x128xf32> to vector<8x32xf32>
    %140 = arith.mulf %131, %139 : vector<8x32xf32>
    %141 = arith.addf %138, %140 : vector<8x32xf32>
    %142 = math.tanh %141 : vector<8x32xf32>
    %cst_47 = arith.constant 1.000000e+00 : f32
    %143 = vector.broadcast %cst_47 : f32 to vector<8x32xf32>
    %144 = arith.subf %143, %137 : vector<8x32xf32>
    %145 = arith.mulf %144, %142 : vector<8x32xf32>
    %146 = arith.mulf %137, %120 : vector<8x32xf32>
    %147 = arith.addf %145, %146 : vector<8x32xf32>
    %cst_48 = arith.constant dense<0.000000e+00> : vector<8x128xf32>
    %148 = tpu.matmul %147, %1, %cst_48 {dimension_numbers = #tpu.dot_dimension_numbers<[1], [0], [0], [1], [0, 0, 1, 1], [], []>} : vector<8x32xf32>, vector<32x128xf32>, vector<8x128xf32> -> vector<8x128xf32>
    %149 = arith.addf %148, %7 : vector<8x128xf32>
    %c0_49 = arith.constant 0 : index
    %c512 = arith.constant 512 : index
    %150 = vector.load %arg11[%c0_49, %c512] : memref<8x768xf32, #tpu.memory_space<vmem>>, vector<8x128xf32>
    tpu.vector_store %arg11[%c0_49, %c512], %149 {strides = array<i32>} : memref<8x768xf32, #tpu.memory_space<vmem>>, vector<8x128xf32>,
    %cst_50 = arith.constant dense<0.000000e+00> : vector<8x128xf32>
    %151 = tpu.matmul %147, %0, %cst_50 {dimension_numbers = #tpu.dot_dimension_numbers<[1], [0], [0], [1], [0, 0, 1, 1], [], []>} : vector<8x32xf32>, vector<32x128xf32>, vector<8x128xf32> -> vector<8x128xf32>
    %152 = arith.addf %151, %4 : vector<8x128xf32>
    %153 = vector.extract_strided_slice %152 {offsets = [0, 0], sizes = [8, 32], strides = [1, 1]} : vector<8x128xf32> to vector<8x32xf32>
    %154 = arith.negf %153 : vector<8x32xf32>
    %155 = math.exp %154 : vector<8x32xf32>
    %cst_51 = arith.constant 1.000000e+00 : f32
    %156 = vector.broadcast %cst_51 : f32 to vector<8x32xf32>
    %157 = arith.addf %156, %155 : vector<8x32xf32>
    %158 = arith.divf %156, %157 : vector<8x32xf32>
    %159 = vector.extract_strided_slice %152 {offsets = [0, 32], sizes = [8, 32], strides = [1, 1]} : vector<8x128xf32> to vector<8x32xf32>
    %160 = arith.negf %159 : vector<8x32xf32>
    %161 = math.exp %160 : vector<8x32xf32>
    %cst_52 = arith.constant 1.000000e+00 : f32
    %162 = vector.broadcast %cst_52 : f32 to vector<8x32xf32>
    %163 = arith.addf %162, %161 : vector<8x32xf32>
    %164 = arith.divf %162, %163 : vector<8x32xf32>
    %165 = vector.extract_strided_slice %152 {offsets = [0, 64], sizes = [8, 32], strides = [1, 1]} : vector<8x128xf32> to vector<8x32xf32>
    %166 = vector.extract_strided_slice %152 {offsets = [0, 96], sizes = [8, 32], strides = [1, 1]} : vector<8x128xf32> to vector<8x32xf32>
    %167 = arith.mulf %158, %166 : vector<8x32xf32>
    %168 = arith.addf %165, %167 : vector<8x32xf32>
    %169 = math.tanh %168 : vector<8x32xf32>
    %cst_53 = arith.constant 1.000000e+00 : f32
    %170 = vector.broadcast %cst_53 : f32 to vector<8x32xf32>
    %171 = arith.subf %170, %164 : vector<8x32xf32>
    %172 = arith.mulf %171, %169 : vector<8x32xf32>
    %173 = arith.mulf %164, %147 : vector<8x32xf32>
    %174 = arith.addf %172, %173 : vector<8x32xf32>
    %cst_54 = arith.constant dense<0.000000e+00> : vector<8x128xf32>
    %175 = tpu.matmul %174, %1, %cst_54 {dimension_numbers = #tpu.dot_dimension_numbers<[1], [0], [0], [1], [0, 0, 1, 1], [], []>} : vector<8x32xf32>, vector<32x128xf32>, vector<8x128xf32> -> vector<8x128xf32>
    %176 = arith.addf %175, %7 : vector<8x128xf32>
    %c0_55 = arith.constant 0 : index
    %c640 = arith.constant 640 : index
    %177 = vector.load %arg11[%c0_55, %c640] : memref<8x768xf32, #tpu.memory_space<vmem>>, vector<8x128xf32>
    tpu.vector_store %arg11[%c0_55, %c640], %176 {strides = array<i32>} : memref<8x768xf32, #tpu.memory_space<vmem>>, vector<8x128xf32>,
    return
  }
  func.func @transform_0(%arg0: i32) -> (i32, i32) {
    %c0_i32 = arith.constant 0 : i32
    %c0_i32_0 = arith.constant 0 : i32
    return %arg0, %c0_i32 : i32, i32
  }
  func.func @transform_1(%arg0: i32) -> (i32, i32) {
    %c0_i32 = arith.constant 0 : i32
    %c0_i32_0 = arith.constant 0 : i32
    %c0_i32_1 = arith.constant 0 : i32
    return %c0_i32, %c0_i32_0 : i32, i32
  }
  func.func @transform_2(%arg0: i32) -> (i32, i32) {
    %c0_i32 = arith.constant 0 : i32
    %c0_i32_0 = arith.constant 0 : i32
    %c0_i32_1 = arith.constant 0 : i32
    return %c0_i32, %c0_i32_0 : i32, i32
  }
  func.func @transform_3(%arg0: i32) -> (i32, i32) {
    %c0_i32 = arith.constant 0 : i32
    %c0_i32_0 = arith.constant 0 : i32
    %c0_i32_1 = arith.constant 0 : i32
    return %c0_i32, %c0_i32_0 : i32, i32
  }
  func.func @transform_4(%arg0: i32) -> (i32, i32) {
    %c0_i32 = arith.constant 0 : i32
    %c0_i32_0 = arith.constant 0 : i32
    %c0_i32_1 = arith.constant 0 : i32
    return %c0_i32, %c0_i32_0 : i32, i32
  }
  func.func @transform_5(%arg0: i32) -> (i32, i32) {
    %c0_i32 = arith.constant 0 : i32
    %c0_i32_0 = arith.constant 0 : i32
    %c0_i32_1 = arith.constant 0 : i32
    return %c0_i32, %c0_i32_0 : i32, i32
  }
  func.func @transform_6(%arg0: i32) -> (i32, i32) {
    %c0_i32 = arith.constant 0 : i32
    %c0_i32_0 = arith.constant 0 : i32
    %c0_i32_1 = arith.constant 0 : i32
    return %c0_i32, %c0_i32_0 : i32, i32
  }
  func.func @transform_7(%arg0: i32) -> (i32, i32) {
    %c0_i32 = arith.constant 0 : i32
    %c0_i32_0 = arith.constant 0 : i32
    %c0_i32_1 = arith.constant 0 : i32
    return %c0_i32, %c0_i32_0 : i32, i32
  }
  func.func @transform_8(%arg0: i32) -> (i32, i32) {
    %c0_i32 = arith.constant 0 : i32
    %c0_i32_0 = arith.constant 0 : i32
    %c0_i32_1 = arith.constant 0 : i32
    return %c0_i32, %c0_i32_0 : i32, i32
  }
  func.func @transform_9(%arg0: i32) -> (i32, i32) {
    %c0_i32 = arith.constant 0 : i32
    %c0_i32_0 = arith.constant 0 : i32
    %c0_i32_1 = arith.constant 0 : i32
    return %c0_i32, %c0_i32_0 : i32, i32
  }
  func.func @transform_10(%arg0: i32) -> (i32, i32) {
    %c0_i32 = arith.constant 0 : i32
    %c0_i32_0 = arith.constant 0 : i32
    return %arg0, %c0_i32 : i32, i32
  }
}

</mosaic_0001>

<bundles_post_ra>
// kernel: tpu_custom_call.1
= control target key start
LH: loop header
LB: loop body
LE: loop exit
PB: predicated region body
PF: predicated region fallthrough
CT: control target
= control target key end

     0   :  { %15 = vsyncpa [#allocation3], 0  ;;  %s2045_s0 = inlined_call_operand.hbm [shape: f32[8,8], index: 0, kind: input, shape index: {}]   ;;  %s2046_s1 = inlined_call_operand.hbm [shape: f32[8,32], index: 1, kind: input, shape index: {}]   ;;  %s2047_s2 = inlined_call_operand.vmem [shape: f32[1,32], index: 2, kind: input, shape index: {}]   ;;  %s2048_s3 = inlined_call_operand.hbm [shape: f32[32,96], index: 3, kind: input, shape index: {}]   ;;  %s2049_s4 = inlined_call_operand.vmem [shape: f32[1,96], index: 4, kind: input, shape index: {}]   ;;  %s2050_s5 = inlined_call_operand.hbm [shape: f32[32,128], index: 5, kind: input, shape index: {}]   ;;  %s2051_s6 = inlined_call_operand.vmem [shape: f32[1,128], index: 6, kind: input, shape index: {}]   ;;  %s2052_s7 = inlined_call_operand.vmem [shape: f32[1,32], index: 7, kind: input, shape index: {}]   ;;  %s2053_s8 = inlined_call_operand.hbm [shape: f32[32,128], index: 8, kind: input, shape index: {}]   ;;  %s2054_s9 = inlined_call_operand.vmem [shape: f32[1,128], index: 9, kind: input, shape index: {}]   ;;  %s2055_s10 = inlined_call_operand.hbm [shape: f32[8,768], index: 10, kind: output, shape index: {}]  }
   0x1   :  { %16 = vsyncpa [#allocation6], 0 }
   0x2   :  { %17 = vsyncpa [#allocation9], 0 }
   0x3   :  { %18 = vsyncpa [#allocation4], 0  ;;  %s1749_s13 = smov [#allocation5]   ;;  %s1609_s17 = scalar_lea.hbm %s2046_s1, 128 }
   0x4   :  { %s35_s14 = sshll.u32 %s1749_s13, 4  ;;  %p1610_p0 = scmp.ne.s32.totalorder %s2046_s1, %s1609_s17  ;;  %s36_s14 = int_to_ptr.vmem [resolvable:$true] %s35_s14 }
   0x5   :  { %p1613_p1 = scmp.lt.u32.totalorder %s1609_s17, %s2046_s1 }
   0x7   :  { %p1615_p2 = pnand %p1613_p1, %p1610_p0 }
   0x9   :  { %1618 = shalt.err (!%p1615_p2)
}
   0xa   :  { %s1619_s22 = scalar_lea.vmem %s36_s14, 128  ;;  %p1624_p4 = scmp.lt.s32.totalorder %s36_s14, %s36_s14 }
   0xb   :  { %p1620_p3 = scmp.ne.s32.totalorder %s36_s14, %s1619_s22  ;;  %p1625_p5 = scmp.lt.s32.totalorder %s1619_s22, %s1619_s22 }
   0xd   :  { %p1626_p6 = por %p1625_p5, %p1624_p4 }
   0xf   :  { %p1627_p7 = pnand %p1626_p6, %p1620_p3 }
  0x11   :  { %1630 = shalt.err (!%p1627_p7)
}
  0x12   :  { %38 = dma.hbm_to_vmem [thread:$0]  %s2046_s1, 128, %s36_s14, [#allocation6]  }
  0x13   :  { %s1750_s25 = smov [#allocation8]   ;;  %s1751_s27 = smov [#allocation2]  }
  0x14   :  { %s60_s26 = sshll.u32 %s1750_s25, 4  ;;  %s25_s28 = sshll.u32 %s1751_s27, 4  ;;  %s61_s26 = int_to_ptr.vmem [resolvable:$true] %s60_s26  ;;  %s26_s28 = int_to_ptr.vmem [resolvable:$true] %s25_s28 }
  0x15   :  { %s1631_s11 = scalar_lea.hbm %s2050_s5, 512 }
  0x16   :  { %p1632_p8 = scmp.ne.s32.totalorder %s2050_s5, %s1631_s11  ;;  %p1635_p9 = scmp.lt.u32.totalorder %s1631_s11, %s2050_s5 }
  0x18   :  { %p1637_p10 = pnand %p1635_p9, %p1632_p8 }
  0x1a   :  { %1640 = shalt.err (!%p1637_p10)
}
  0x1b   :  { %s1641_s1 = scalar_lea.vmem %s61_s26, 512  ;;  %p1646_p12 = scmp.lt.s32.totalorder %s61_s26, %s61_s26 }
  0x1c   :  { %p1642_p11 = scmp.ne.s32.totalorder %s61_s26, %s1641_s1  ;;  %p1647_p13 = scmp.lt.s32.totalorder %s1641_s1, %s1641_s1 }
  0x1e   :  { %p1648_p0 = por %p1647_p13, %p1646_p12 }
  0x20   :  { %p1649_p1 = pnand %p1648_p0, %p1642_p11 }
  0x22   :  { %1652 = shalt.err (!%p1649_p1)
}
  0x23   :  { %s1752_s14 = smov 128   ;;  %s1753_s17 = smov 8  }
  0x24   :  { %66 = dma.hbm_to_vmem [thread:$0]  %s2050_s5, 512, %s61_s26, [#allocation9], %s1752_s14, %s1752_s14, %s1753_s17  }
  0x25   :  { %s1653_s22 = scalar_lea.hbm %s2045_s0, 128 }
  0x26   :  { %p1654_p2 = scmp.ne.s32.totalorder %s2045_s0, %s1653_s22  ;;  %p1657_p3 = scmp.lt.u32.totalorder %s1653_s22, %s2045_s0 }
  0x28   :  { %p1659_p4 = pnand %p1657_p3, %p1654_p2 }
  0x2a   :  { %1662 = shalt.err (!%p1659_p4)
}
  0x2b   :  { %s1663_s29 = scalar_lea.vmem %s26_s28, 128  ;;  %p1668_p6 = scmp.lt.s32.totalorder %s26_s28, %s26_s28 }
  0x2c   :  { %p1664_p5 = scmp.ne.s32.totalorder %s26_s28, %s1663_s29  ;;  %p1669_p7 = scmp.lt.s32.totalorder %s1663_s29, %s1663_s29 }
  0x2e   :  { %p1670_p8 = por %p1669_p7, %p1668_p6 }
  0x30   :  { %p1671_p9 = pnand %p1670_p8, %p1664_p5 }
  0x32   :  { %1674 = shalt.err (!%p1671_p9)
}
  0x33   :  { %28 = dma.hbm_to_vmem [thread:$0]  %s2045_s0, 128, %s26_s28, [#allocation3]  }
  0x34   :  { %s1754_s30 = smov [#allocation7]   ;;  %s1755_s12 = smov [#allocation10]  }
  0x35   :  { %s46_s11 = sshll.u32 %s1754_s30, 4  ;;  %s76_s13 = sshll.u32 %s1755_s12, 4  ;;  %s47_s11 = int_to_ptr.vmem [resolvable:$true] %s46_s11  ;;  %s77_s13 = int_to_ptr.vmem [resolvable:$true] %s76_s13 }
  0x36   :  { %s1675_s1 = scalar_lea.hbm %s2048_s3, 512 }
  0x37   :  { %p1676_p10 = scmp.ne.s32.totalorder %s2048_s3, %s1675_s1  ;;  %p1679_p11 = scmp.lt.u32.totalorder %s1675_s1, %s2048_s3 }
  0x39   :  { %p1681_p12 = pnand %p1679_p11, %p1676_p10 }
  0x3b   :  { %1684 = shalt.err (!%p1681_p12)
}
  0x3c   :  { %s1685_s0 = scalar_lea.vmem %s47_s11, 512  ;;  %p1690_p0 = scmp.lt.s32.totalorder %s47_s11, %s47_s11 }
  0x3d   :  { %p1686_p13 = scmp.ne.s32.totalorder %s47_s11, %s1685_s0  ;;  %p1691_p1 = scmp.lt.s32.totalorder %s1685_s0, %s1685_s0 }
  0x3f   :  { %p1692_p2 = por %p1691_p1, %p1690_p0 }
  0x41   :  { %p1693_p3 = pnand %p1692_p2, %p1686_p13 }
  0x43   :  { %1696 = shalt.err (!%p1693_p3)
}
  0x44   :  { %52 = dma.hbm_to_vmem [thread:$0]  %s2048_s3, 512, %s47_s11, [#allocation6], %s1752_s14, %s1752_s14, %s1753_s17  }
  0x45   :  { %s1697_s25 = scalar_lea.hbm %s2053_s8, 512 }
  0x46   :  { %p1698_p4 = scmp.ne.s32.totalorder %s2053_s8, %s1697_s25  ;;  %p1701_p5 = scmp.lt.u32.totalorder %s1697_s25, %s2053_s8 }
  0x48   :  { %p1703_p6 = pnand %p1701_p5, %p1698_p4 }
  0x4a   :  { %1706 = shalt.err (!%p1703_p6)
}
  0x4b   :  { %s1707_s30 = scalar_lea.vmem %s77_s13, 512  ;;  %p1712_p8 = scmp.lt.s32.totalorder %s77_s13, %s77_s13 }
  0x4c   :  { %p1708_p7 = scmp.ne.s32.totalorder %s77_s13, %s1707_s30  ;;  %p1713_p9 = scmp.lt.s32.totalorder %s1707_s30, %s1707_s30 }
  0x4e   :  { %p1714_p10 = por %p1713_p9, %p1712_p8 }
  0x50   :  { %p1715_p11 = pnand %p1714_p10, %p1708_p7 }
  0x52   :  { %1718 = shalt.err (!%p1715_p11)
}
  0x53   :  { %82 = dma.hbm_to_vmem [thread:$0]  %s2053_s8, 512, %s77_s13, [#allocation9], %s1752_s14, %s1752_s14, %s1753_s17  }
  0x54   :  { %1741 = dma.done.wait [#allocation3], 128  }
  0x55   :  { %1742 = vsyncadd [#allocation3], 4294967168 }
  0x56   :  { %1743 = dma.done.wait [#allocation6], 640  }
  0x57   :  { %1744 = vsyncadd [#allocation6], 4294966656 }
  0x58   :  { %1745 = dma.done.wait [#allocation9], 1024  }
  0x59   :  { %1746 = vsyncadd [#allocation9], 4294966272  ;;  %v1756_v0 = vmov 0.0   ;;  %vm1757_vm0 = vmmov 0   ;;  %v1758_v1 = vmov 0.0|0.0   ;;  %vm131_vm1 = vcmask 64512  }
  0x5a   :  { %1350 = vmatprep.subr.mxu0 %v1756_v0  ;;  %1352 = vmatprep.mubr.msk.f32.mxu0 %vm1757_vm0, %v1756_v0  ;;  %v123_v2 = vld [vmem:[#allocation5] sm:$0xff]  ;;  %v122_v3 = vld [vmem:[#allocation2] sm:$0xff]  ;;  %v205_v4 = vld [vmem:[#allocation7] sm:$0xff]  ;;  %vm216_vm2 = vcmask 261120   ;;  %s1759_s15 = smov 64   ;;  %s1761_s19 = smov 32  }
  0x5b   :  { %1487 = vmatprep.subr.bf16.mxu1 %v1758_v1  ;;  %1363 = vmatprep.mubr.msk.f32.mxu1 %vm1757_vm0, %v1756_v0  ;;  %v206_v5 = vld [vmem:[#allocation7 + $0x8] sm:$0xff]  ;;  %v207_v7 = vld [vmem:[#allocation7 + $0x10] sm:$0xff]  ;;  %v208_v8 = vld [vmem:[#allocation7 + $0x18] sm:$0xff] }
  0x5c   :  { %1351 = vmatpush3.msra.mxu0 %v123_v2  ;;  %v1488_v6 = vpack.c.bf16 %v206_v5, %v205_v4  ;;  %v1491_v9 = vpack.c.bf16 %v208_v8, %v207_v7  ;;  %v1266_v10 = vld [vmem:[%s2047_s2] ss:$0 sm:$0xff]  ;;  %v104_v26 = vld [vmem:[#allocation10] sm:$0xff]  ;;  %v105_v27 = vld [vmem:[#allocation10 + $0x8] sm:$0xff] }
  0x5d   :  { %1353 = vmatmul.mubr.msk.f32.vlgmr.msra.gmra.mrb[0].mxu0 %vm131_vm1, %v122_v3  ;;  %1493 = vmatprep.subr.bf16.mxu0 %v1758_v1  ;;  %v1268_v14 = vld [vmem:[%s2049_s4] ss:$0 sm:$0xff]  ;;  %v100_v28 = vld [vmem:[#allocation8] sm:$0xff]  ;;  %v1911_v29 = vpack.c.bf16 %v105_v27, %v104_v26  ;;  %v101_v30 = vld [vmem:[#allocation8 + $0x8] sm:$0xff]  ;;  %s1760_s4 = smov 96  }
  0x5e   :  { %1374 = vmatprep.mubr.msk.f32.mxu0 %vm1757_vm0, %v1756_v0  ;;  %1489 = vmatpush3.bf16.msra.mxu1 %v1488_v6  ;;  %v1271_v21 = vld [vmem:[%s2052_s7] ss:$0 sm:$0xff]  ;;  %v107_v32 = vld [vmem:[#allocation10 + $0x18] sm:$0xff]  ;;  %v1913_v33 = vpack.c.bf16 %v101_v30, %v100_v28 }
  0x5f   :  { %1490 = vmatprep.subr.bf16.mxu1 %v1758_v1  ;;  %v106_v31 = vld [vmem:[#allocation10 + $0x10] sm:$0xff]  ;;  %v103_v35 = vld [vmem:[#allocation8 + $0x18] sm:$0xff]  ;;  %1495 = vmatpush3.bf16.msra.mxu0 %v1911_v29 }
  0x60   :  { %v102_v34 = vld [vmem:[#allocation8 + $0x10] sm:$0xff]  ;;  %v1916_v36 = vpack.c.bf16 %v107_v32, %v106_v31  ;;  %1496 = vmatprep.subr.bf16.mxu0 %v1758_v1 }
  0x61   :  { %v1920_v37 = vpack.c.bf16 %v103_v35, %v102_v34  ;;  %v1946_v43 = vld [vmem:[%s2054_s9] ss:$0 sm:$0xff] }
  0x62   :  { %1492 = vmatpush3.bf16.msra.mxu1 %v1491_v9  ;;  %v1951_v44 = vld [vmem:[%s2051_s6] ss:$0 sm:$0xff]  ;;  %s1762_s6 = smov [#allocation11]  }
  0x63   :  { %1499 = vmatprep.subr.bf16.mxu1 %v1758_v1  ;;  %1498 = vmatpush3.bf16.msra.mxu0 %v1916_v36  ;;  %s1253_s9 = sshll.u32 %s1762_s6, 4  ;;  %s1254_s9 = int_to_ptr.vmem [resolvable:$true] %s1253_s9 }
  0x64   :  { %1505 = vmatprep.subr.bf16.mxu0 %v1758_v1  ;;  %s1719_s20 = scalar_lea.vmem %s1254_s9, 768  ;;  %p1724_p13 = scmp.lt.s32.totalorder %s1254_s9, %s1254_s9 }
  0x65   :  { %p1720_p12 = scmp.ne.s32.totalorder %s1254_s9, %s1719_s20  ;;  %p1725_p0 = scmp.lt.s32.totalorder %s1719_s20, %s1719_s20 }
  0x67   :  { %p1726_p1 = por %p1725_p0, %p1724_p13 }
  0x69   :  { %p1727_p2 = pnand %p1726_p1, %p1720_p12 }
 0x130   :  { %v201_v11 = vpop.f32.mrb[0].mxu0 }
 0x131   :  { %v202_v12 = vadd.f32 %v1266_v10, %v201_v11  ;;  %v1354_v13 = vpop.f32.mrb[1].mxu0 }
 0x133   :  { %1364 = vmatmul.mubr.msk.f32.vlgmr.msra.gmra.mrb[0].mxu1 %vm216_vm2, %v202_v12 }
 0x134   :  { %1385 = vmatprep.mubr.msk.f32.mxu1 %vm1757_vm0, %v1756_v0  ;;  %1501 = vmatpush3.bf16.msra.mxu1 %v1913_v33 }
 0x135   :  { %1502 = vmatprep.subr.bf16.mxu1 %v1758_v1 }
 0x138   :  { %1504 = vmatpush3.bf16.msra.mxu1 %v1920_v37 }
 0x139   :  { %1511 = vmatprep.subr.bf16.mxu1 %v1758_v1 }
 0x206   :  { %v286_v15 = vpop.f32.mrb[0].mxu1 }
 0x207   :  { %v287_v16 = vadd.f32 %v1268_v14, %v286_v15  ;;  %v1365_v17 = vpop.f32.mrb[1].mxu1 }
 0x209   :  { %v1270_v18 = vmul.f32 -1.442695, %v287_v16 }
 0x20b   :  { %1573 = vpow2.f32 %v1270_v18 }
 0x215   :  { %v1574_v19 = vpop.eup %1573 }
 0x216   :  { %v293_v20 = vadd.f32 1.0, %v1574_v19 }
 0x218   :  { %1575 = vrcp.f32 %v293_v20 }
 0x222   :  { %v1576_v22 = vpop.eup %1575 }
 0x223   :  { %v303_v23 = vmul.f32 %v1576_v22, %v1271_v21  ;;  %v310_v39 = vsub.f32 1.0, %v1576_v22 }
 0x225   :  { %305 = vrot.lane.b32.xlu0 %v303_v23, %s1759_s15 }
 0x297   :  { %v306_v24 = vpop.permute.xlu0 %305 }
 0x298   :  { %v308_v25 = vadd.f32 %v306_v24, %v287_v16 }
 0x29a   :  { %1577 = vtanh.f32 %v308_v25 }
 0x2a4   :  { %v1578_v38 = vpop.eup %1577 }
 0x2a5   :  { %312 = vrot.lane.b32.xlu0 %v1578_v38, %s1760_s4 }
 0x317   :  { %v313_v40 = vpop.permute.xlu0 %312 }
 0x318   :  { %v315_v41 = vmul.f32 %v313_v40, %v310_v39 }
 0x31a   :  { %317 = vrot.lane.b32.xlu1 %v315_v41, %s1760_s4 }
 0x38c   :  { %v318_v42 = vpop.permute.xlu1 %317 }
 0x38d   :  { %1375 = vmatmul.mubr.msk.f32.vlgmr.msra.gmra.mrb[2].mxu0 %vm216_vm2, %v318_v42  ;;  %1386 = vmatmul.mubr.msk.f32.vlgmr.msra.gmra.mrb[2].mxu1 %vm216_vm2, %v318_v42 }
 0x38e   :  { %1507 = vmatpush3.bf16.msra.mxu0 %v1911_v29  ;;  %1513 = vmatpush3.bf16.msra.mxu1 %v1913_v33 }
 0x38f   :  { %1508 = vmatprep.subr.bf16.mxu0 %v1758_v1  ;;  %1514 = vmatprep.subr.bf16.mxu1 %v1758_v1 }
 0x390   :  { %1396 = vmatprep.mubr.msk.f32.mxu0 %vm1757_vm0, %v1756_v0  ;;  %1407 = vmatprep.mubr.msk.f32.mxu1 %vm1757_vm0, %v1756_v0 }
 0x392   :  { %1510 = vmatpush3.bf16.msra.mxu0 %v1916_v36  ;;  %1516 = vmatpush3.bf16.msra.mxu1 %v1920_v37 }
 0x393   :  { %1517 = vmatprep.subr.bf16.mxu0 %v1758_v1  ;;  %1523 = vmatprep.subr.bf16.mxu1 %v1758_v1 }
 0x460   :  { %v387_v45 = vpop.f32.mrb[2].mxu0  ;;  %v458_v46 = vpop.f32.mrb[2].mxu1 }
 0x461   :  { %v388_v47 = vadd.f32 %v1946_v43, %v387_v45  ;;  %v459_v48 = vadd.f32 %v1951_v44, %v458_v46  ;;  %v1376_v49 = vpop.f32.mrb[3].mxu0  ;;  %v1387_v50 = vpop.f32.mrb[3].mxu1 }
 0x463   :  { %391 = vst [vmem:[#allocation11] sm:$0xff] %v388_v47  ;;  %469 = vrot.lane.b32.xlu1 %v459_v48, %s1761_s19  ;;  %v1274_v51 = vmul.f32 -1.442695, %v459_v48 }
 0x465   :  { %1579 = vpow2.f32 %v1274_v51 }
 0x46f   :  { %v1580_v52 = vpop.eup %1579 }
 0x470   :  { %v465_v53 = vadd.f32 1.0, %v1580_v52 }
 0x472   :  { %1581 = vrcp.f32 %v465_v53 }
 0x47c   :  { %v1582_v54 = vpop.eup %1581 }
 0x47d   :  { %v479_v60 = vsub.f32 1.0, %v1582_v54  ;;  %v485_v62 = vmul.f32 %v1582_v54, %v315_v41 }
 0x4d5   :  { %v470_v55 = vpop.permute.xlu1 %469 }
 0x4d6   :  { %v472_v56 = vmul.f32 %v1582_v54, %v470_v55 }
 0x4d8   :  { %474 = vrot.lane.b32.xlu0 %v472_v56, %s1759_s15 }
 0x54a   :  { %v475_v57 = vpop.permute.xlu0 %474 }
 0x54b   :  { %v477_v58 = vadd.f32 %v475_v57, %v459_v48 }
 0x54d   :  { %1583 = vtanh.f32 %v477_v58 }
 0x557   :  { %v1584_v59 = vpop.eup %1583 }
 0x558   :  { %481 = vrot.lane.b32.xlu1 %v1584_v59, %s1760_s4 }
 0x5ca   :  { %v482_v61 = vpop.permute.xlu1 %481 }
 0x5cb   :  { %v484_v63 = vmul.f32 %v482_v61, %v479_v60 }
 0x5cd   :  { %v486_v2 = vadd.f32 %v485_v62, %v484_v63 }
 0x5cf   :  { %488 = vrot.lane.b32.xlu0 %v486_v2, %s1760_s4 }
 0x641   :  { %v489_v3 = vpop.permute.xlu0 %488 }
 0x642   :  { %1397 = vmatmul.mubr.msk.f32.vlgmr.msra.gmra.mrb[4].mxu0 %vm216_vm2, %v489_v3  ;;  %1408 = vmatmul.mubr.msk.f32.vlgmr.msra.gmra.mrb[4].mxu1 %vm216_vm2, %v489_v3 }
 0x643   :  { %1519 = vmatpush3.bf16.msra.mxu0 %v1911_v29  ;;  %1525 = vmatpush3.bf16.msra.mxu1 %v1913_v33 }
 0x644   :  { %1520 = vmatprep.subr.bf16.mxu0 %v1758_v1  ;;  %1526 = vmatprep.subr.bf16.mxu1 %v1758_v1 }
 0x645   :  { %1418 = vmatprep.mubr.msk.f32.mxu0 %vm1757_vm0, %v1756_v0  ;;  %1429 = vmatprep.mubr.msk.f32.mxu1 %vm1757_vm0, %v1756_v0 }
 0x647   :  { %1522 = vmatpush3.bf16.msra.mxu0 %v1916_v36  ;;  %1528 = vmatpush3.bf16.msra.mxu1 %v1920_v37 }
 0x648   :  { %1529 = vmatprep.subr.bf16.mxu0 %v1758_v1  ;;  %1535 = vmatprep.subr.bf16.mxu1 %v1758_v1 }
 0x715   :  { %v558_v4 = vpop.f32.mrb[4].mxu0  ;;  %v629_v5 = vpop.f32.mrb[4].mxu1 }
 0x716   :  { %v559_v6 = vadd.f32 %v1946_v43, %v558_v4  ;;  %v630_v7 = vadd.f32 %v1951_v44, %v629_v5  ;;  %v1398_v8 = vpop.f32.mrb[5].mxu0  ;;  %v1409_v9 = vpop.f32.mrb[5].mxu1 }
 0x718   :  { %562 = vst [vmem:[#allocation11 + $0x8] sm:$0xff] %v559_v6  ;;  %640 = vrot.lane.b32.xlu1 %v630_v7, %s1761_s19  ;;  %v1277_v10 = vmul.f32 -1.442695, %v630_v7 }
 0x71a   :  { %1585 = vpow2.f32 %v1277_v10 }
 0x724   :  { %v1586_v11 = vpop.eup %1585 }
 0x725   :  { %v636_v12 = vadd.f32 1.0, %v1586_v11 }
 0x727   :  { %1587 = vrcp.f32 %v636_v12 }
 0x731   :  { %v1588_v13 = vpop.eup %1587 }
 0x732   :  { %v650_v19 = vsub.f32 1.0, %v1588_v13  ;;  %v656_v21 = vmul.f32 %v1588_v13, %v486_v2 }
 0x78a   :  { %v641_v14 = vpop.permute.xlu1 %640 }
 0x78b   :  { %v643_v15 = vmul.f32 %v1588_v13, %v641_v14 }
 0x78d   :  { %645 = vrot.lane.b32.xlu0 %v643_v15, %s1759_s15 }
 0x7ff   :  { %v646_v16 = vpop.permute.xlu0 %645 }
 0x800   :  { %v648_v17 = vadd.f32 %v646_v16, %v630_v7 }
 0x802   :  { %1589 = vtanh.f32 %v648_v17 }
 0x80c   :  { %v1590_v18 = vpop.eup %1589 }
 0x80d   :  { %652 = vrot.lane.b32.xlu1 %v1590_v18, %s1760_s4 }
 0x87f   :  { %v653_v20 = vpop.permute.xlu1 %652 }
 0x880   :  { %v655_v22 = vmul.f32 %v653_v20, %v650_v19 }
 0x882   :  { %v657_v23 = vadd.f32 %v656_v21, %v655_v22 }
 0x884   :  { %659 = vrot.lane.b32.xlu0 %v657_v23, %s1760_s4 }
 0x8f6   :  { %v660_v24 = vpop.permute.xlu0 %659 }
 0x8f7   :  { %1419 = vmatmul.mubr.msk.f32.vlgmr.msra.gmra.mrb[6].mxu0 %vm216_vm2, %v660_v24  ;;  %1430 = vmatmul.mubr.msk.f32.vlgmr.msra.gmra.mrb[6].mxu1 %vm216_vm2, %v660_v24 }
 0x8f8   :  { %1531 = vmatpush3.bf16.msra.mxu0 %v1911_v29  ;;  %1537 = vmatpush3.bf16.msra.mxu1 %v1913_v33 }
 0x8f9   :  { %1532 = vmatprep.subr.bf16.mxu0 %v1758_v1  ;;  %1538 = vmatprep.subr.bf16.mxu1 %v1758_v1 }
 0x8fa   :  { %1440 = vmatprep.mubr.msk.f32.mxu0 %vm1757_vm0, %v1756_v0  ;;  %1451 = vmatprep.mubr.msk.f32.mxu1 %vm1757_vm0, %v1756_v0 }
 0x8fc   :  { %1534 = vmatpush3.bf16.msra.mxu0 %v1916_v36  ;;  %1540 = vmatpush3.bf16.msra.mxu1 %v1920_v37 }
 0x8fd   :  { %1541 = vmatprep.subr.bf16.mxu0 %v1758_v1  ;;  %1547 = vmatprep.subr.bf16.mxu1 %v1758_v1 }
 0x9ca   :  { %v729_v25 = vpop.f32.mrb[6].mxu0  ;;  %v800_v26 = vpop.f32.mrb[6].mxu1 }
 0x9cb   :  { %v730_v27 = vadd.f32 %v1946_v43, %v729_v25  ;;  %v801_v28 = vadd.f32 %v1951_v44, %v800_v26  ;;  %v1420_v30 = vpop.f32.mrb[7].mxu0  ;;  %v1431_v31 = vpop.f32.mrb[7].mxu1 }
 0x9cd   :  { %733 = vst [vmem:[#allocation11 + $0x10] sm:$0xff] %v730_v27  ;;  %811 = vrot.lane.b32.xlu1 %v801_v28, %s1761_s19  ;;  %v1280_v32 = vmul.f32 -1.442695, %v801_v28 }
 0x9cf   :  { %1591 = vpow2.f32 %v1280_v32 }
 0x9d9   :  { %v1592_v34 = vpop.eup %1591 }
 0x9da   :  { %v807_v35 = vadd.f32 1.0, %v1592_v34 }
 0x9dc   :  { %1593 = vrcp.f32 %v807_v35 }
 0x9e6   :  { %v1594_v38 = vpop.eup %1593 }
 0x9e7   :  { %v821_v46 = vsub.f32 1.0, %v1594_v38  ;;  %v827_v48 = vmul.f32 %v1594_v38, %v657_v23 }
 0xa3f   :  { %v812_v39 = vpop.permute.xlu1 %811 }
 0xa40   :  { %v814_v40 = vmul.f32 %v1594_v38, %v812_v39 }
 0xa42   :  { %816 = vrot.lane.b32.xlu0 %v814_v40, %s1759_s15 }
 0xab4   :  { %v817_v41 = vpop.permute.xlu0 %816 }
 0xab5   :  { %v819_v42 = vadd.f32 %v817_v41, %v801_v28 }
 0xab7   :  { %1595 = vtanh.f32 %v819_v42 }
 0xac1   :  { %v1596_v45 = vpop.eup %1595 }
 0xac2   :  { %823 = vrot.lane.b32.xlu1 %v1596_v45, %s1760_s4 }
 0xb34   :  { %v824_v47 = vpop.permute.xlu1 %823 }
 0xb35   :  { %v826_v49 = vmul.f32 %v824_v47, %v821_v46 }
 0xb37   :  { %v828_v50 = vadd.f32 %v827_v48, %v826_v49 }
 0xb39   :  { %830 = vrot.lane.b32.xlu0 %v828_v50, %s1760_s4 }
 0xbab   :  { %v831_v51 = vpop.permute.xlu0 %830 }
 0xbac   :  { %1441 = vmatmul.mubr.msk.f32.vlgmr.msra.gmra.mrb[8].mxu0 %vm216_vm2, %v831_v51  ;;  %1452 = vmatmul.mubr.msk.f32.vlgmr.msra.gmra.mrb[8].mxu1 %vm216_vm2, %v831_v51 }
 0xbad   :  { %1543 = vmatpush3.bf16.msra.mxu0 %v1911_v29  ;;  %1549 = vmatpush3.bf16.msra.mxu1 %v1913_v33 }
 0xbae   :  { %1544 = vmatprep.subr.bf16.mxu0 %v1758_v1  ;;  %1550 = vmatprep.subr.bf16.mxu1 %v1758_v1 }
 0xbaf   :  { %1462 = vmatprep.mubr.msk.f32.mxu0 %vm1757_vm0, %v1756_v0  ;;  %1473 = vmatprep.mubr.msk.f32.mxu1 %vm1757_vm0, %v1756_v0 }
 0xbb1   :  { %1546 = vmatpush3.bf16.msra.mxu0 %v1916_v36  ;;  %1552 = vmatpush3.bf16.msra.mxu1 %v1920_v37 }
 0xbb2   :  { %1553 = vmatprep.subr.bf16.mxu0 %v1758_v1 }
 0xc7f   :  { %v900_v52 = vpop.f32.mrb[8].mxu0  ;;  %v971_v53 = vpop.f32.mrb[8].mxu1 }
 0xc80   :  { %v901_v33 = vadd.f32 %v1946_v43, %v900_v52  ;;  %v972_v54 = vadd.f32 %v1951_v44, %v971_v53  ;;  %v1442_v55 = vpop.f32.mrb[9].mxu0  ;;  %v1453_v56 = vpop.f32.mrb[9].mxu1 }
 0xc82   :  { %904 = vst [vmem:[#allocation11 + $0x18] sm:$0xff] %v901_v33  ;;  %982 = vrot.lane.b32.xlu1 %v972_v54, %s1761_s19  ;;  %v1283_v57 = vmul.f32 -1.442695, %v972_v54 }
 0xc84   :  { %1597 = vpow2.f32 %v1283_v57 }
 0xc8e   :  { %v1598_v58 = vpop.eup %1597 }
 0xc8f   :  { %v978_v59 = vadd.f32 1.0, %v1598_v58 }
 0xc91   :  { %1599 = vrcp.f32 %v978_v59 }
 0xc9b   :  { %v1600_v60 = vpop.eup %1599 }
 0xc9c   :  { %v992_v3 = vsub.f32 1.0, %v1600_v60  ;;  %v998_v5 = vmul.f32 %v1600_v60, %v828_v50 }
 0xcf4   :  { %v983_v37 = vpop.permute.xlu1 %982 }
 0xcf5   :  { %v985_v61 = vmul.f32 %v1600_v60, %v983_v37 }
 0xcf7   :  { %987 = vrot.lane.b32.xlu0 %v985_v61, %s1759_s15 }
 0xd69   :  { %v988_v62 = vpop.permute.xlu0 %987 }
 0xd6a   :  { %v990_v63 = vadd.f32 %v988_v62, %v972_v54 }
 0xd6c   :  { %1601 = vtanh.f32 %v990_v63 }
 0xd76   :  { %v1602_v2 = vpop.eup %1601 }
 0xd77   :  { %994 = vrot.lane.b32.xlu1 %v1602_v2, %s1760_s4 }
 0xde9   :  { %v995_v4 = vpop.permute.xlu1 %994 }
 0xdea   :  { %v997_v6 = vmul.f32 %v995_v4, %v992_v3 }
 0xdec   :  { %v999_v7 = vadd.f32 %v998_v5, %v997_v6 }
 0xdee   :  { %1001 = vrot.lane.b32.xlu0 %v999_v7, %s1760_s4 }
 0xe60   :  { %v1002_v8 = vpop.permute.xlu0 %1001 }
 0xe61   :  { %1463 = vmatmul.mubr.msk.f32.vlgmr.msra.gmra.mrb[10].mxu0 %vm216_vm2, %v1002_v8  ;;  %1474 = vmatmul.mubr.msk.f32.vlgmr.msra.gmra.mrb[10].mxu1 %vm216_vm2, %v1002_v8 }
 0xe62   :  { %1555 = vmatpush3.bf16.msra.mxu0 %v1911_v29  ;;  %1484 = vmatprep.mubr.msk.f32.mxu0 %vm1757_vm0, %v1756_v0 }
 0xe63   :  { %1556 = vmatprep.subr.bf16.mxu0 %v1758_v1 }
 0xe66   :  { %1558 = vmatpush3.bf16.msra.mxu0 %v1916_v36 }
 0xf34   :  { %v1071_v9 = vpop.f32.mrb[10].mxu0  ;;  %v1142_v10 = vpop.f32.mrb[10].mxu1 }
 0xf35   :  { %v1072_v11 = vadd.f32 %v1946_v43, %v1071_v9  ;;  %v1143_v12 = vadd.f32 %v1951_v44, %v1142_v10  ;;  %v1464_v13 = vpop.f32.mrb[11].mxu0  ;;  %v1475_v14 = vpop.f32.mrb[11].mxu1 }
 0xf37   :  { %1075 = vst [vmem:[#allocation11 + $0x20] sm:$0xff] %v1072_v11  ;;  %1153 = vrot.lane.b32.xlu1 %v1143_v12, %s1761_s19  ;;  %v1286_v15 = vmul.f32 -1.442695, %v1143_v12 }
 0xf39   :  { %1603 = vpow2.f32 %v1286_v15 }
 0xf43   :  { %v1604_v29 = vpop.eup %1603 }
 0xf44   :  { %v1149_v16 = vadd.f32 1.0, %v1604_v29 }
 0xf46   :  { %1605 = vrcp.f32 %v1149_v16 }
 0xf50   :  { %v1606_v0 = vpop.eup %1605 }
 0xf51   :  { %v1163_v44 = vsub.f32 1.0, %v1606_v0  ;;  %v1169_v21 = vmul.f32 %v1606_v0, %v999_v7 }
 0xfa9   :  { %v1154_v1 = vpop.permute.xlu1 %1153 }
 0xfaa   :  { %v1156_v17 = vmul.f32 %v1606_v0, %v1154_v1 }
 0xfac   :  { %1158 = vrot.lane.b32.xlu0 %v1156_v17, %s1759_s15 }
0x101e   :  { %v1159_v36 = vpop.permute.xlu0 %1158 }
0x101f   :  { %v1161_v18 = vadd.f32 %v1159_v36, %v1143_v12 }
0x1021   :  { %1607 = vtanh.f32 %v1161_v18 }
0x102b   :  { %v1608_v19 = vpop.eup %1607 }
0x102c   :  { %1165 = vrot.lane.b32.xlu1 %v1608_v19, %s1760_s4 }
0x109e   :  { %v1166_v20 = vpop.permute.xlu1 %1165 }
0x109f   :  { %v1168_v22 = vmul.f32 %v1166_v20, %v1163_v44 }
0x10a1   :  { %v1170_v23 = vadd.f32 %v1169_v21, %v1168_v22 }
0x10a3   :  { %1172 = vrot.lane.b32.xlu0 %v1170_v23, %s1760_s4 }
0x1115   :  { %v1173_v24 = vpop.permute.xlu0 %1172 }
0x1116   :  { %1485 = vmatmul.mubr.msk.f32.vlgmr.msra.gmra.mrb[12].mxu0 %vm216_vm2, %v1173_v24 }
0x11e9   :  { %v1242_v25 = vpop.f32.mrb[12].mxu0 }
0x11ea   :  { %v1243_v26 = vadd.f32 %v1946_v43, %v1242_v25  ;;  %v1486_v27 = vpop.f32.mrb[13].mxu0 }
0x11ec   :  { %1246 = vst [vmem:[#allocation11 + $0x28] sm:$0xff] %v1243_v26 }
0x11ed   :  { %1730 = shalt.err (!%p1727_p2)
}
0x11ee   :  { %s1731_s28 = scalar_lea.hbm %s2055_s10, 768 }
0x11ef   :  { %p1732_p3 = scmp.ne.s32.totalorder %s2055_s10, %s1731_s28  ;;  %p1735_p4 = scmp.lt.u32.totalorder %s1731_s28, %s2055_s10 }
0x11f1   :  { %p1737_p5 = pnand %p1735_p4, %p1732_p3 }
0x11f3   :  { %1740 = shalt.err (!%p1737_p5)
}
0x11f4   :  { %1256 = dma.vmem_to_hbm [thread:$0]  %s1254_s9, 768, %s2055_s10, [#allocation4]  }
0x11f5   :  { %1747 = dma.done.wait [#allocation4], 768  }
0x11f6   :  { %1748 = vsyncadd [#allocation4], 4294966528 }
0x11f7   :  { %1260 = vsyncpa [#allocation3], 1 }
0x11f8   :  { %1261 = vsyncpa [#allocation6], 1 }
0x11f9   :  { %1262 = vsyncpa [#allocation9], 1 }
0x11fa   :  { %1263 = vsyncpa [#allocation4], 1 }

</bundles_post_ra>
